<compile_context>
chip_gen: v5e
topology: v5e:2x2
jax: 0.10.0
libtpu: 0.0.40
codegen_flags: <defaults>
</compile_context>

<pallas_src>
import functools

import jax
import jax.numpy as jnp
from jax.experimental import pallas as pl
from jax.experimental.pallas import tpu as pltpu


def _round_up(n, m):
    return ((n + m - 1) // m) * m


def _pwff_kernel(x_ref, w1_ref, b1_ref, w2_ref, b2_ref, o_ref):
    # x_ref: (tm, H) tile of rows; weights/biases resident (constant index_map).
    x = x_ref[...]
    w_dtype = w1_ref.dtype                         # bf16 (default) or f32 MXU operands
    # conv1 (k=1) == x @ W1^T ; f32 accumulation, bias/ReLU in f32.
    h = jnp.dot(x.astype(w_dtype), w1_ref[...],
                preferred_element_type=jnp.float32) + b1_ref[...]
    # TODO(synk): dropout1/dropout2 are identity at inference; training-mode
    # stochastic masking is not implemented here.
    h = jnp.maximum(h, 0.0)                        # ReLU
    # conv2 (k=1) == h @ W2^T ; bias + residual in f32.
    y = jnp.dot(h.astype(w_dtype), w2_ref[...],
                preferred_element_type=jnp.float32) + b2_ref[...]
    o_ref[...] = (y + x.astype(jnp.float32)).astype(o_ref.dtype)


def _vmem_need(tm, H, x_bytes, w_bytes):
    # VMEM buffers are laid out on (8,128) tiles, so budget with the padded
    # lane count regardless of H.
    Hp = _round_up(H, 128)
    return (2 * tm * Hp * x_bytes          # x tile double buffers (input)
            + 2 * tm * Hp * x_bytes        # out tile double buffers
            + 2 * 2 * Hp * Hp * w_bytes    # W1^T / W2^T (default double-buffered)
            + 4 * Hp * 4                   # biases
            + 3 * tm * Hp * 4)             # f32 intermediates (x up-cast, h, y)


def _auto_tile(M, H, x_bytes):
    # Target ~2 MiB of x DMA per grid step, clamped to [512, 4096] rows.
    tm = _round_up(max((2 << 20) // max(H * x_bytes, 1), 8), 8)
    tm = min(max(tm, 512), 4096)
    tm = min(tm, _round_up(M, 8))          # don't over-size tiny inputs
    # Keep >= 2 grid steps so v7x's second TensorCore gets work, as long as a
    # half-sized tile still moves >= ~1 MiB.
    half = _round_up(-(-M // 2), 8)
    if half * H * x_bytes >= (1 << 20):
        tm = min(tm, half)
    return tm


@functools.partial(jax.jit, static_argnames=("tm", "matmul_dtype"))
def pointwise_feed_forward(x, conv1_w, conv1_b, conv2_w, conv2_b,
                           *, tm=None, matmul_dtype=jnp.bfloat16):
    """x: (B, L, H).  conv*_w: (H_out, H_in, 1), conv*_b: (H,)."""
    B, L, H = x.shape
    M = B * L
    x_bytes = x.dtype.itemsize
    w_bytes = jnp.dtype(matmul_dtype).itemsize

    # Per-generation VMEM cap (v7x: 64 MiB per TC, v5e/v6e: 128 MiB).
    try:
        vmem_cap = int(pltpu.get_tpu_info().vmem_capacity_bytes)
    except Exception:
        vmem_cap = 64 << 20                # smallest across v5e/v6e/v7x
    budget_cap = int(vmem_cap * 0.7)       # headroom for Mosaic internal scratch

    if tm is None:
        tm_eff = _auto_tile(M, H, x_bytes)
        while tm_eff > 8 and _vmem_need(tm_eff, H, x_bytes, w_bytes) > budget_cap:
            tm_eff = max(_round_up(tm_eff // 2, 8), 8)
    else:
        tm_eff = max(_round_up(tm, 8), 8)

    grid = pl.cdiv(M, tm_eff)              # partial last block: Pallas masks it
    vmem_limit = min(
        budget_cap,
        max(16 << 20, int(_vmem_need(tm_eff, H, x_bytes, w_bytes) * 1.3) + (2 << 20)))

    # Rows, no padding (rows are independent; partial last block is safe).
    x2d = x.reshape(M, H)

    # Conv1d(k=1): per row y = x @ W.T + b.  Pre-transpose so the kernel does a
    # plain x @ Wt; cast weights to the MXU operand dtype host-side.
    w1t = jnp.squeeze(conv1_w, -1).T.astype(matmul_dtype)   # (H_in, H_out)
    w2t = jnp.squeeze(conv2_w, -1).T.astype(matmul_dtype)
    b1 = conv1_b.astype(jnp.float32).reshape(1, H)
    b2 = conv2_b.astype(jnp.float32).reshape(1, H)

    cost = pl.CostEstimate(
        flops=4 * M * H * H,                                    # two MxHxH matmuls
        bytes_accessed=2 * M * H * x_bytes + 2 * H * H * w_bytes,
        transcendentals=0)

    out2d = pl.pallas_call(
        _pwff_kernel,
        out_shape=jax.ShapeDtypeStruct((M, H), x.dtype),
        grid_spec=pltpu.PrefetchScalarGridSpec(
            num_scalar_prefetch=0,
            grid=(grid,),
            in_specs=[
                pl.BlockSpec((tm_eff, H), lambda i: (i, 0)),    # x rows tile
                pl.BlockSpec((H, H), lambda i: (0, 0)),         # W1^T (resident)
                pl.BlockSpec((1, H), lambda i: (0, 0)),         # b1
                pl.BlockSpec((H, H), lambda i: (0, 0)),         # W2^T (resident)
                pl.BlockSpec((1, H), lambda i: (0, 0)),         # b2
            ],
            out_specs=pl.BlockSpec((tm_eff, H), lambda i: (i, 0)),
        ),
        compiler_params=pltpu.CompilerParams(
            dimension_semantics=("parallel",),   # shards the row grid across TCs
            vmem_limit_bytes=vmem_limit,
        ),
        cost_estimate=cost,
    )(x2d, w1t, b1, w2t, b2)

    return out2d.reshape(B, L, H)


def _reference(x, w1, b1, w2, b2):
    # Pure-JAX reference mirroring the PyTorch forward (eval mode).
    xt = jnp.swapaxes(x, -1, -2)                                   # (B, H, L)
    h = jnp.einsum('oi,bil->bol', jnp.squeeze(w1, -1), xt) + b1[None, :, None]
    h = jnp.maximum(h, 0.0)
    y = jnp.einsum('oi,bil->bol', jnp.squeeze(w2, -1), h) + b2[None, :, None]
    return jnp.swapaxes(y, -1, -2) + x


def _make_params(key, H):
    k1, k2, k3, k4 = jax.random.split(key, 4)
    bound = 1.0 / (H ** 0.5)
    w1 = jax.random.uniform(k1, (H, H, 1), jnp.float32, -bound, bound)
    b1 = jax.random.uniform(k2, (H,), jnp.float32, -bound, bound)
    w2 = jax.random.uniform(k3, (H, H, 1), jnp.float32, -bound, bound)
    b2 = jax.random.uniform(k4, (H,), jnp.float32, -bound, bound)
    return w1, b1, w2, b2


if __name__ == "__main__":
    key = jax.random.PRNGKey(0)

    # Case 1: small SASRec-like shape (H < 128 exercises the full-extent lane dim).
    B, L, H = 2, 8, 32
    kx, kp = jax.random.split(key)
    x = jax.random.normal(kx, (B, L, H), dtype=jnp.float32)
    w1, b1, w2, b2 = _make_params(kp, H)
    ref = _reference(x, w1, b1, w2, b2)

    # f32 MXU operands → strict tolerance.
    out = jax.block_until_ready(
        pointwise_feed_forward(x, w1, b1, w2, b2, matmul_dtype=jnp.float32))
    assert out.shape == (B, L, H)
    assert jnp.allclose(out, ref, atol=1e-5, rtol=1e-5), "f32 mismatch vs reference"

    # Default path: bf16 MXU operands, f32 accumulation → looser tolerance.
    out_bf = jax.block_until_ready(pointwise_feed_forward(x, w1, b1, w2, b2))
    assert jnp.allclose(out_bf, ref, atol=5e-2, rtol=5e-2), "bf16 mismatch vs reference"

    # Case 2: ragged shape (M not a multiple of 8, H not a multiple of 128).
    B2, L2, H2 = 3, 7, 50
    kx2, kp2 = jax.random.split(kp)
    x2 = jax.random.normal(kx2, (B2, L2, H2), dtype=jnp.float32)
    p2 = _make_params(kp2, H2)
    out2 = jax.block_until_ready(
        pointwise_feed_forward(x2, *p2, matmul_dtype=jnp.float32))
    ref2 = _reference(x2, *p2)
    assert out2.shape == (B2, L2, H2)
    assert jnp.allclose(out2, ref2, atol=1e-5, rtol=1e-5), "ragged mismatch vs reference"

    # Case 3: force a multi-step grid with a partial last block (M=23, tm=8) to
    # exercise the unpadded row path (masked OOB writeback on the last tile).
    B3, L3, H3 = 1, 23, 32
    kx3, kp3 = jax.random.split(kp2)
    x3 = jax.random.normal(kx3, (B3, L3, H3), dtype=jnp.float32)
    p3 = _make_params(kp3, H3)
    out3 = jax.block_until_ready(
        pointwise_feed_forward(x3, *p3, tm=8, matmul_dtype=jnp.float32))
    ref3 = _reference(x3, *p3)
    assert out3.shape == (B3, L3, H3)
    assert jnp.allclose(out3, ref3, atol=1e-5, rtol=1e-5), "partial-block mismatch"

    print("KERNEL_OK")
</pallas_src>

<mosaic_0001>
module attributes {stable_mosaic.version = 11 : i64} {
  func.func @_pwff_kernel(%arg0: i32, %arg1: memref<16x32xf32, #tpu.memory_space<vmem>>, %arg2: memref<32x32xf32, #tpu.memory_space<vmem>>, %arg3: memref<1x32xf32, #tpu.memory_space<vmem>>, %arg4: memref<32x32xf32, #tpu.memory_space<vmem>>, %arg5: memref<1x32xf32, #tpu.memory_space<vmem>>, %arg6: memref<16x32xf32, #tpu.memory_space<vmem>>) attributes {dimension_semantics = [#tpu.dimension_semantics<parallel>], iteration_bounds = array<i64: 1>, scalar_prefetch = 0 : i64, scratch_operands = 0 : i64, tpu.core_type = #tpu.core_type<tc>, window_params = [{transform_indices = @transform_0, window_bounds = array<i64: 16, 32>}, {pipeline_mode = #tpu.pipeline_mode<synchronous>, transform_indices = @transform_1, window_bounds = array<i64: 32, 32>}, {pipeline_mode = #tpu.pipeline_mode<synchronous>, transform_indices = @transform_2, window_bounds = array<i64: 1, 32>}, {pipeline_mode = #tpu.pipeline_mode<synchronous>, transform_indices = @transform_3, window_bounds = array<i64: 32, 32>}, {pipeline_mode = #tpu.pipeline_mode<synchronous>, transform_indices = @transform_4, window_bounds = array<i64: 1, 32>}, {transform_indices = @transform_5, window_bounds = array<i64: 16, 32>}]} {
    %c0 = arith.constant 0 : index
    %c0_0 = arith.constant 0 : index
    %0 = vector.load %arg1[%c0, %c0_0] : memref<16x32xf32, #tpu.memory_space<vmem>>, vector<16x32xf32>
    %c0_1 = arith.constant 0 : index
    %c0_2 = arith.constant 0 : index
    %1 = vector.load %arg2[%c0_1, %c0_2] : memref<32x32xf32, #tpu.memory_space<vmem>>, vector<32x32xf32>
    %cst = arith.constant dense<0.000000e+00> : vector<16x32xf32>
    %2 = tpu.matmul %0, %1, %cst {dimension_numbers = #tpu.dot_dimension_numbers<[1], [0], [0], [1], [0, 0, 1, 1], [], []>} : vector<16x32xf32>, vector<32x32xf32>, vector<16x32xf32> -> vector<16x32xf32>
    %c0_3 = arith.constant 0 : index
    %c0_4 = arith.constant 0 : index
    %3 = vector.load %arg3[%c0_3, %c0_4] : memref<1x32xf32, #tpu.memory_space<vmem>>, vector<1x32xf32>
    %4 = vector.broadcast %3 : vector<1x32xf32> to vector<16x32xf32>
    %5 = arith.addf %2, %4 : vector<16x32xf32>
    %cst_5 = arith.constant 0.000000e+00 : f32
    %6 = vector.broadcast %cst_5 : f32 to vector<16x32xf32>
    %7 = arith.maximumf %5, %6 : vector<16x32xf32>
    %c0_6 = arith.constant 0 : index
    %c0_7 = arith.constant 0 : index
    %8 = vector.load %arg4[%c0_6, %c0_7] : memref<32x32xf32, #tpu.memory_space<vmem>>, vector<32x32xf32>
    %cst_8 = arith.constant dense<0.000000e+00> : vector<16x32xf32>
    %9 = tpu.matmul %7, %8, %cst_8 {dimension_numbers = #tpu.dot_dimension_numbers<[1], [0], [0], [1], [0, 0, 1, 1], [], []>} : vector<16x32xf32>, vector<32x32xf32>, vector<16x32xf32> -> vector<16x32xf32>
    %c0_9 = arith.constant 0 : index
    %c0_10 = arith.constant 0 : index
    %10 = vector.load %arg5[%c0_9, %c0_10] : memref<1x32xf32, #tpu.memory_space<vmem>>, vector<1x32xf32>
    %11 = vector.broadcast %10 : vector<1x32xf32> to vector<16x32xf32>
    %12 = arith.addf %9, %11 : vector<16x32xf32>
    %13 = arith.addf %12, %0 : vector<16x32xf32>
    %c0_11 = arith.constant 0 : index
    %c0_12 = arith.constant 0 : index
    %14 = vector.load %arg6[%c0_11, %c0_12] : memref<16x32xf32, #tpu.memory_space<vmem>>, vector<16x32xf32>
    tpu.vector_store %arg6[%c0_11, %c0_12], %13 {strides = array<i32>} : memref<16x32xf32, #tpu.memory_space<vmem>>, vector<16x32xf32>,
    return
  }
  func.func @transform_0(%arg0: i32) -> (i32, i32) {
    %c0_i32 = arith.constant 0 : i32
    %c0_i32_0 = arith.constant 0 : i32
    return %arg0, %c0_i32 : i32, i32
  }
  func.func @transform_1(%arg0: i32) -> (i32, i32) {
    %c0_i32 = arith.constant 0 : i32
    %c0_i32_0 = arith.constant 0 : i32
    %c0_i32_1 = arith.constant 0 : i32
    return %c0_i32, %c0_i32_0 : i32, i32
  }
  func.func @transform_2(%arg0: i32) -> (i32, i32) {
    %c0_i32 = arith.constant 0 : i32
    %c0_i32_0 = arith.constant 0 : i32
    %c0_i32_1 = arith.constant 0 : i32
    return %c0_i32, %c0_i32_0 : i32, i32
  }
  func.func @transform_3(%arg0: i32) -> (i32, i32) {
    %c0_i32 = arith.constant 0 : i32
    %c0_i32_0 = arith.constant 0 : i32
    %c0_i32_1 = arith.constant 0 : i32
    return %c0_i32, %c0_i32_0 : i32, i32
  }
  func.func @transform_4(%arg0: i32) -> (i32, i32) {
    %c0_i32 = arith.constant 0 : i32
    %c0_i32_0 = arith.constant 0 : i32
    %c0_i32_1 = arith.constant 0 : i32
    return %c0_i32, %c0_i32_0 : i32, i32
  }
  func.func @transform_5(%arg0: i32) -> (i32, i32) {
    %c0_i32 = arith.constant 0 : i32
    %c0_i32_0 = arith.constant 0 : i32
    return %arg0, %c0_i32 : i32, i32
  }
}

</mosaic_0001>

<bundles_post_ra>
// kernel: pointwise_feed_forward.1
= control target key start
LH: loop header
LB: loop body
LE: loop exit
PB: predicated region body
PF: predicated region fallthrough
CT: control target
= control target key end

     0   :  { %s243_s0 = inlined_call_operand.vmem [shape: f32[16,32], index: 0, kind: input, shape index: {}]   ;;  %s244_s1 = inlined_call_operand.vmem [shape: f32[32,32], index: 1, kind: input, shape index: {}]   ;;  %s245_s2 = inlined_call_operand.vmem [shape: f32[1,32], index: 2, kind: input, shape index: {}]   ;;  %s246_s3 = inlined_call_operand.vmem [shape: f32[32,32], index: 3, kind: input, shape index: {}]   ;;  %s247_s4 = inlined_call_operand.vmem [shape: f32[1,32], index: 4, kind: input, shape index: {}]   ;;  %s248_s5 = inlined_call_operand.hbm [shape: f32[16,32], index: 5, kind: output, shape index: {}]  }
   0x1   :  { %v26_v0 = vld [vmem:[%s244_s1 + $0x18] sm:$0xff]  ;;  %v25_v1 = vld [vmem:[%s244_s1 + $0x10] sm:$0xff]  ;;  %v24_v2 = vld [vmem:[%s244_s1 + $0x8] sm:$0xff] }
   0x2   :  { %126 = vmatpush.msra.mxu2 %v26_v0  ;;  %50 = vmatpush.msra.mxu0 %v26_v0  ;;  %v66_v3 = vld [vmem:[%s246_s3 + $0x18] sm:$0xff] }
   0x4   :  { %127 = vmatpush.msra.mxu2 %v25_v1  ;;  %51 = vmatpush.msra.mxu0 %v25_v1 }
   0x5   :  { %10 = vsyncpa [#allocation3], 0  ;;  %v23_v4 = vld [vmem:[%s244_s1] sm:$0xff]  ;;  %130 = vmatpush.msra.mxu3 %v66_v3  ;;  %89 = vmatpush.msra.mxu1 %v66_v3  ;;  %v22_v5 = vld [vmem:[%s243_s0 + $0x8] sm:$0xff]  ;;  %vm31_vm0 = vcmask 261120   ;;  %s110_s17 = sshll.u32 %s248_s5, 4  ;;  %s111_s17 = int_to_ptr.hbm [resolvable:$true] %s110_s17 }
   0x6   :  { %128 = vmatpush.msra.mxu2 %v24_v2  ;;  %52 = vmatpush.msra.mxu0 %v24_v2  ;;  %v21_v6 = vld [vmem:[%s243_s0] sm:$0xff]  ;;  %v65_v7 = vld [vmem:[%s246_s3 + $0x10] sm:$0xff]  ;;  %v64_v8 = vld [vmem:[%s246_s3 + $0x8] sm:$0xff]  ;;  %s166_s18 = smov 128  }
   0x7   :  { %131 = vmatpush.msra.mxu3 %v65_v7  ;;  %90 = vmatpush.msra.mxu1 %v65_v7  ;;  %v63_v9 = vld [vmem:[%s246_s3] sm:$0xff] }
   0x8   :  { %129 = vmatpush.msra.mxu2 %v23_v4  ;;  %53 = vmatpush.msra.mxu0 %v23_v4  ;;  %v137_v10 = vld [vmem:[%s245_s2] ss:$0 sm:$0xff]  ;;  %s165_s2 = smov [#allocation2]  }
   0x9   :  { %123 = vmatmul.msk.f32.vlgmr.msra.gmra.mxu2 %vm31_vm0, %v22_v5  ;;  %122 = vmatmul.msk.f32.vlgmr.msra.gmra.mxu0 %vm31_vm0, %v21_v6  ;;  %v138_v17 = vld [vmem:[%s247_s4] ss:$0 sm:$0xff]  ;;  %s108_s3 = sshll.u32 %s165_s2, 4  ;;  %s167_s4 = smov 8   ;;  %s109_s3 = int_to_ptr.vmem [resolvable:$true] %s108_s3 }
   0xa   :  { %132 = vmatpush.msra.mxu3 %v64_v8  ;;  %91 = vmatpush.msra.mxu1 %v64_v8 }
   0xc   :  { %133 = vmatpush.msra.mxu3 %v63_v9  ;;  %92 = vmatpush.msra.mxu1 %v63_v9 }
  0x86   :  { %v55_v11 = vpop.f32.mrf.mxu0 }
  0x87   :  { %v56_v12 = vadd.f32 %v137_v10, %v55_v11 }
  0x89   :  { %v61_v13 = vmax.f32 %v56_v12, 0.0 }
  0x8b   :  { %124 = vmatmul.msk.f32.vlgmr.msra.gmra.mxu1 %vm31_vm0, %v61_v13 }
  0x8c   :  { %v58_v14 = vpop.f32.mrf.mxu2 }
  0x8d   :  { %v59_v15 = vadd.f32 %v137_v10, %v58_v14 }
  0x8f   :  { %v62_v16 = vmax.f32 %v59_v15, 0.0 }
  0x91   :  { %125 = vmatmul.msk.f32.vlgmr.msra.gmra.mxu3 %vm31_vm0, %v62_v16 }
 0x108   :  { %v94_v18 = vpop.f32.mrf.mxu1 }
 0x109   :  { %v95_v19 = vadd.f32 %v138_v17, %v94_v18 }
 0x10b   :  { %v100_v20 = vadd.f32 %v95_v19, %v21_v6 }
 0x10d   :  { %102 = vst.msk [vmem:[#allocation2] sm:$0xff] %vm31_vm0, %v100_v20 }
 0x114   :  { %v97_v21 = vpop.f32.mrf.mxu3 }
 0x115   :  { %v98_v22 = vadd.f32 %v138_v17, %v97_v21 }
 0x117   :  { %v101_v23 = vadd.f32 %v98_v22, %v22_v5 }
 0x119   :  { %103 = vst.msk [vmem:[#allocation2 + $0x8] sm:$0xff] %vm31_vm0, %v101_v23 }
 0x11a   :  { %116 = dma.vmem_to_hbm [thread:$0]  %s109_s3, 256, %s111_s17, [#allocation3], %s166_s18, %s166_s18, %s167_s4  }
 0x11b   :  { %163 = dma.done.wait [#allocation3], 256  }
 0x11c   :  { %164 = vsyncadd [#allocation3], 4294967040 }
 0x11d   :  { %121 = vsyncpa [#allocation3], 1 }

</bundles_post_ra>
